<compile_context>
chip_gen: v5e
topology: v5e:2x2
jax: 0.10.0
libtpu: 0.0.40
codegen_flags: <defaults>
</compile_context>

<pallas_src>
import functools
import math

import jax
import jax.numpy as jnp
from jax import lax
from jax.experimental import pallas as pl
from jax.experimental.pallas import tpu as pltpu


def _vmem_limit_bytes(S, C, tq):
    f32, bf16 = 4, 2
    est = 0
    est += 2 * S * C * f32              # x_full block (double-buffered)
    est += 2 * tq * C * f32             # x query-tile block
    est += 2 * tq * C * f32             # output block
    est += 2 * 4 * C * C * bf16         # wq/wk/wv/wout (double-buffered by the pipeline)
    est += 2 * C * C * f32              # gmat
    est += 2 * 3 * C * f32              # gamma / beta / bout
    # live in-kernel intermediates
    est += 2 * S * C * f32              # norm f32 + x*x temp
    est += 3 * S * C * bf16             # norm bf16, k, v
    est += 2 * tq * C * bf16            # norm_q, q
    est += tq * S * (f32 + bf16)        # scores f32 + p bf16 (per head, sequential)
    est += 2 * tq * C * f32             # output accumulator + temp
    est = int(est * 1.5) + (1 << 20)    # headroom for compiler temporaries
    return max(32 * 1024 * 1024, min(est, 64 * 1024 * 1024))


def _self_attention_kernel(xf_ref, xq_ref, gamma_ref, beta_ref, gmat_ref,
                           wqT_ref, wkT_ref, wvT_ref, woutT_ref, bout_ref,
                           o_ref, *, n_head, eps):
    x = xf_ref[0]            # (S, C) f32: all tokens of this batch element
    x_q = xq_ref[0]          # (tq, C) f32: this grid step's query tokens
    S, C = x.shape
    tq = x_q.shape[0]
    hd = C // n_head

    # ---- GroupNorm statistics over the whole image (f32) ----
    sum_x = jnp.sum(x, axis=0, keepdims=True)            # (1, C)
    sum_x2 = jnp.sum(x * x, axis=0, keepdims=True)       # (1, C)
    mean_c = jnp.dot(sum_x, gmat_ref[...], preferred_element_type=jnp.float32)   # (1, C)
    e2_c = jnp.dot(sum_x2, gmat_ref[...], preferred_element_type=jnp.float32)    # (1, C)
    # TODO(synk): single-pass E[x^2]-mean^2 can cancel for large-mean activations; use two-pass if needed.
    var_c = e2_c - mean_c * mean_c
    scale_c = lax.rsqrt(var_c + eps) * gamma_ref[...]     # (1, C)
    shift_c = beta_ref[...] - mean_c * scale_c            # (1, C)

    # ---- K / V for all tokens, Q for the query tile (bf16 MXU operands, f32 accumulation) ----
    norm = (x * scale_c + shift_c).astype(jnp.bfloat16)       # (S, C)
    norm_q = (x_q * scale_c + shift_c).astype(jnp.bfloat16)   # (tq, C)
    k = jnp.dot(norm, wkT_ref[...], preferred_element_type=jnp.float32).astype(jnp.bfloat16)
    v = jnp.dot(norm, wvT_ref[...], preferred_element_type=jnp.float32).astype(jnp.bfloat16)
    q = jnp.dot(norm_q, wqT_ref[...], preferred_element_type=jnp.float32).astype(jnp.bfloat16)
    # (1/sqrt(C) softmax scale is already folded into wqT)

    # ---- attention per head + accumulated output projection (no concat) ----
    y = jnp.zeros((tq, C), jnp.float32)
    for n in range(n_head):
        lo = n * hd
        qh = q[:, lo:lo + hd]
        kh = k[:, lo:lo + hd]
        vh = v[:, lo:lo + hd]
        s = lax.dot_general(qh, kh, (((1,), (1,)), ((), ())),
                            preferred_element_type=jnp.float32)            # (tq, S)
        s = s - jnp.max(s, axis=-1, keepdims=True)
        p = jnp.exp(s)                                                      # f32 softmax math
        p = p * pl.reciprocal(jnp.sum(p, axis=-1, keepdims=True), approx=True)
        oh = jnp.dot(p.astype(jnp.bfloat16), vh, preferred_element_type=jnp.float32)   # (tq, hd)
        y = y + jnp.dot(oh.astype(jnp.bfloat16), woutT_ref[lo:lo + hd, :],
                        preferred_element_type=jnp.float32)

    o_ref[0] = (y + bout_ref[...] + x_q).astype(o_ref.dtype)


def self_attention_pallas(x_nchw, gamma, beta, w_qkv, w_out, b_out,
                          *, n_head=1, norm_groups=4, eps=1e-5, tq=None):
    B, C, H, W = x_nchw.shape
    S = H * W
    assert C % norm_groups == 0 and C % n_head == 0
    hd = C // n_head
    cg = C // norm_groups

    if tq is None:
        tq = S
        for cand in (512, 256, 128, 64, 32, 16, 8):
            if S % cand == 0:
                tq = cand
                break
    assert S % tq == 0 and (tq == S or tq % 8 == 0)
    n_q = S // tq

    # NCHW -> (B, S, C) tokens (channel on the 128-lane axis).
    x_tok = jnp.transpose(x_nchw, (0, 2, 3, 1)).reshape(B, S, C).astype(jnp.float32)

    # Parameter plumbing (plain JAX glue, outside the kernel).
    grp = jnp.arange(C) // cg
    gmat = (grp[:, None] == grp[None, :]).astype(jnp.float32) / float(S * cg)   # (C, C) group-average

    w = w_qkv.reshape(3 * C, C).astype(jnp.float32).reshape(n_head, 3 * hd, C)
    wq = w[:, :hd, :].reshape(C, C)              # head-major Q output channels
    wk = w[:, hd:2 * hd, :].reshape(C, C)
    wv = w[:, 2 * hd:, :].reshape(C, C)
    wqT = (wq.T * (1.0 / math.sqrt(C))).astype(jnp.bfloat16)   # softmax scale folded into Q weight
    wkT = wk.T.astype(jnp.bfloat16)
    wvT = wv.T.astype(jnp.bfloat16)
    woutT = w_out.reshape(C, C).T.astype(jnp.bfloat16)
    gamma2 = gamma.reshape(1, C).astype(jnp.float32)
    beta2 = beta.reshape(1, C).astype(jnp.float32)
    bout2 = b_out.reshape(1, C).astype(jnp.float32)

    kernel = functools.partial(_self_attention_kernel, n_head=n_head, eps=float(eps))

    out_tok = pl.pallas_call(
        kernel,
        out_shape=jax.ShapeDtypeStruct((B, S, C), jnp.float32),
        grid=(B, n_q),
        in_specs=[
            pl.BlockSpec((1, S, C), lambda b, qi: (b, 0, 0)),     # all tokens of batch b (K/V, stats)
            pl.BlockSpec((1, tq, C), lambda b, qi: (b, qi, 0)),   # this query tile
            pl.BlockSpec((1, C), lambda b, qi: (0, 0)),           # gamma
            pl.BlockSpec((1, C), lambda b, qi: (0, 0)),           # beta
            pl.BlockSpec((C, C), lambda b, qi: (0, 0)),           # gmat
            pl.BlockSpec((C, C), lambda b, qi: (0, 0)),           # wqT (scaled)
            pl.BlockSpec((C, C), lambda b, qi: (0, 0)),           # wkT
            pl.BlockSpec((C, C), lambda b, qi: (0, 0)),           # wvT
            pl.BlockSpec((C, C), lambda b, qi: (0, 0)),           # woutT
            pl.BlockSpec((1, C), lambda b, qi: (0, 0)),           # bout
        ],
        out_specs=pl.BlockSpec((1, tq, C), lambda b, qi: (b, qi, 0)),
        compiler_params=pltpu.CompilerParams(
            dimension_semantics=("parallel", "parallel"),
            vmem_limit_bytes=_vmem_limit_bytes(S, C, tq)),
    )(x_tok, x_tok, gamma2, beta2, gmat, wqT, wkT, wvT, woutT, bout2)

    # tokens -> NCHW
    return jnp.transpose(out_tok.reshape(B, H, W, C), (0, 3, 1, 2))


def self_attention_ref(x, gamma, beta, w_qkv, w_out, b_out,
                       *, n_head=1, norm_groups=4, eps=1e-5):
    """Pure-JAX reference mirroring the PyTorch forward (for validation)."""
    B, C, H, W = x.shape
    hd = C // n_head
    xg = x.reshape(B, norm_groups, C // norm_groups, H, W)
    mean = xg.mean(axis=(2, 3, 4), keepdims=True)
    var = ((xg - mean) ** 2).mean(axis=(2, 3, 4), keepdims=True)
    norm = ((xg - mean) / jnp.sqrt(var + eps)).reshape(B, C, H, W)
    norm = norm * gamma.reshape(1, C, 1, 1) + beta.reshape(1, C, 1, 1)
    qkv = jnp.einsum('oc,bchw->bohw', w_qkv.reshape(3 * C, C), norm)
    qkv = qkv.reshape(B, n_head, hd * 3, H, W)
    q, k, v = qkv[:, :, :hd], qkv[:, :, hd:2 * hd], qkv[:, :, 2 * hd:]
    attn = jnp.einsum('bnchw,bncyx->bnhwyx', q, k) / math.sqrt(C)
    attn = jax.nn.softmax(attn.reshape(B, n_head, H, W, -1), axis=-1)
    attn = attn.reshape(B, n_head, H, W, H, W)
    out = jnp.einsum('bnhwyx,bncyx->bnchw', attn, v).reshape(B, C, H, W)
    out = jnp.einsum('oc,bchw->bohw', w_out.reshape(C, C), out) + b_out.reshape(1, C, 1, 1)
    return out + x


if __name__ == "__main__":
    B, C, H, W = 2, 8, 8, 8
    n_head, norm_groups = 1, 4

    key = jax.random.PRNGKey(0)
    k_x, k_g, k_b, k_qkv, k_out, k_bo = jax.random.split(key, 6)
    x = jax.random.normal(k_x, (B, C, H, W), jnp.float32)
    gamma = 1.0 + 0.1 * jax.random.normal(k_g, (C,), jnp.float32)
    beta = 0.1 * jax.random.normal(k_b, (C,), jnp.float32)
    w_qkv = jax.random.normal(k_qkv, (3 * C, C, 1, 1), jnp.float32) / math.sqrt(C)
    w_out = jax.random.normal(k_out, (C, C, 1, 1), jnp.float32) / math.sqrt(C)
    b_out = 0.1 * jax.random.normal(k_bo, (C,), jnp.float32)

    # tq=32 -> 2 query tiles per batch element (exercises the (B, S//tq) grid).
    out = self_attention_pallas(x, gamma, beta, w_qkv, w_out, b_out,
                                n_head=n_head, norm_groups=norm_groups, tq=32)
    out = jax.block_until_ready(out)

    ref = self_attention_ref(x, gamma, beta, w_qkv, w_out, b_out,
                             n_head=n_head, norm_groups=norm_groups)
    err = float(jnp.max(jnp.abs(out - ref)))
    assert out.shape == (B, C, H, W)
    # bf16 MXU operands + approx reciprocal => loosened tolerance (per review).
    assert jnp.allclose(out, ref, atol=5e-2, rtol=2e-2), f"max abs err {err}"
    print("KERNEL_OK")
</pallas_src>

<mosaic_0001>
module attributes {stable_mosaic.version = 11 : i64} {
  func.func @_self_attention_kernel(%arg0: i32, %arg1: i32, %arg2: memref<1x64x8xf32, #tpu.memory_space<vmem>>, %arg3: memref<1x32x8xf32, #tpu.memory_space<vmem>>, %arg4: memref<1x8xf32, #tpu.memory_space<vmem>>, %arg5: memref<1x8xf32, #tpu.memory_space<vmem>>, %arg6: memref<8x8xf32, #tpu.memory_space<vmem>>, %arg7: memref<8x8xbf16, #tpu.memory_space<vmem>>, %arg8: memref<8x8xbf16, #tpu.memory_space<vmem>>, %arg9: memref<8x8xbf16, #tpu.memory_space<vmem>>, %arg10: memref<8x8xbf16, #tpu.memory_space<vmem>>, %arg11: memref<1x8xf32, #tpu.memory_space<vmem>>, %arg12: memref<1x32x8xf32, #tpu.memory_space<vmem>>) attributes {dimension_semantics = [#tpu.dimension_semantics<parallel>, #tpu.dimension_semantics<parallel>], iteration_bounds = array<i64: 2, 2>, scalar_prefetch = 0 : i64, scratch_operands = 0 : i64, tpu.core_type = #tpu.core_type<tc>, window_params = [{transform_indices = @transform_0, window_bounds = array<i64: 1, 64, 8>}, {transform_indices = @transform_1, window_bounds = array<i64: 1, 32, 8>}, {pipeline_mode = #tpu.pipeline_mode<synchronous>, transform_indices = @transform_2, window_bounds = array<i64: 1, 8>}, {pipeline_mode = #tpu.pipeline_mode<synchronous>, transform_indices = @transform_3, window_bounds = array<i64: 1, 8>}, {pipeline_mode = #tpu.pipeline_mode<synchronous>, transform_indices = @transform_4, window_bounds = array<i64: 8, 8>}, {pipeline_mode = #tpu.pipeline_mode<synchronous>, transform_indices = @transform_5, window_bounds = array<i64: 8, 8>}, {pipeline_mode = #tpu.pipeline_mode<synchronous>, transform_indices = @transform_6, window_bounds = array<i64: 8, 8>}, {pipeline_mode = #tpu.pipeline_mode<synchronous>, transform_indices = @transform_7, window_bounds = array<i64: 8, 8>}, {pipeline_mode = #tpu.pipeline_mode<synchronous>, transform_indices = @transform_8, window_bounds = array<i64: 8, 8>}, {pipeline_mode = #tpu.pipeline_mode<synchronous>, transform_indices = @transform_9, window_bounds = array<i64: 1, 8>}, {transform_indices = @transform_10, window_bounds = array<i64: 1, 32, 8>}]} {
    %c0 = arith.constant 0 : index
    %c0_0 = arith.constant 0 : index
    %c0_1 = arith.constant 0 : index
    %0 = vector.load %arg2[%c0, %c0_0, %c0_1] : memref<1x64x8xf32, #tpu.memory_space<vmem>>, vector<1x64x8xf32>
    %1 = vector.shape_cast %0 : vector<1x64x8xf32> to vector<64x8xf32>
    %c0_2 = arith.constant 0 : index
    %c0_3 = arith.constant 0 : index
    %c0_4 = arith.constant 0 : index
    %2 = vector.load %arg3[%c0_2, %c0_3, %c0_4] : memref<1x32x8xf32, #tpu.memory_space<vmem>>, vector<1x32x8xf32>
    %3 = vector.shape_cast %2 : vector<1x32x8xf32> to vector<32x8xf32>
    %cst = arith.constant dense<0.000000e+00> : vector<8xf32>
    %4 = vector.multi_reduction <add>, %1, %cst [0] : vector<64x8xf32> to vector<8xf32>
    %5 = vector.shape_cast %4 : vector<8xf32> to vector<1x8xf32>
    %6 = arith.mulf %1, %1 : vector<64x8xf32>
    %cst_5 = arith.constant dense<0.000000e+00> : vector<8xf32>
    %7 = vector.multi_reduction <add>, %6, %cst_5 [0] : vector<64x8xf32> to vector<8xf32>
    %8 = vector.shape_cast %7 : vector<8xf32> to vector<1x8xf32>
    %c0_6 = arith.constant 0 : index
    %c0_7 = arith.constant 0 : index
    %9 = vector.load %arg6[%c0_6, %c0_7] : memref<8x8xf32, #tpu.memory_space<vmem>>, vector<8x8xf32>
    %cst_8 = arith.constant dense<0.000000e+00> : vector<1x8xf32>
    %10 = tpu.matmul %5, %9, %cst_8 {dimension_numbers = #tpu.dot_dimension_numbers<[1], [0], [0], [1], [0, 0, 1, 1], [], []>} : vector<1x8xf32>, vector<8x8xf32>, vector<1x8xf32> -> vector<1x8xf32>
    %c0_9 = arith.constant 0 : index
    %c0_10 = arith.constant 0 : index
    %11 = vector.load %arg6[%c0_9, %c0_10] : memref<8x8xf32, #tpu.memory_space<vmem>>, vector<8x8xf32>
    %cst_11 = arith.constant dense<0.000000e+00> : vector<1x8xf32>
    %12 = tpu.matmul %8, %11, %cst_11 {dimension_numbers = #tpu.dot_dimension_numbers<[1], [0], [0], [1], [0, 0, 1, 1], [], []>} : vector<1x8xf32>, vector<8x8xf32>, vector<1x8xf32> -> vector<1x8xf32>
    %13 = arith.mulf %10, %10 : vector<1x8xf32>
    %14 = arith.subf %12, %13 : vector<1x8xf32>
    %cst_12 = arith.constant 9.99999974E-6 : f32
    %15 = vector.broadcast %cst_12 : f32 to vector<1x8xf32>
    %16 = arith.addf %14, %15 : vector<1x8xf32>
    %17 = math.rsqrt %16 : vector<1x8xf32>
    %c0_13 = arith.constant 0 : index
    %c0_14 = arith.constant 0 : index
    %18 = vector.load %arg4[%c0_13, %c0_14] : memref<1x8xf32, #tpu.memory_space<vmem>>, vector<1x8xf32>
    %19 = arith.mulf %17, %18 : vector<1x8xf32>
    %c0_15 = arith.constant 0 : index
    %c0_16 = arith.constant 0 : index
    %20 = vector.load %arg5[%c0_15, %c0_16] : memref<1x8xf32, #tpu.memory_space<vmem>>, vector<1x8xf32>
    %21 = arith.mulf %10, %19 : vector<1x8xf32>
    %22 = arith.subf %20, %21 : vector<1x8xf32>
    %23 = vector.broadcast %19 : vector<1x8xf32> to vector<64x8xf32>
    %24 = arith.mulf %1, %23 : vector<64x8xf32>
    %25 = vector.broadcast %22 : vector<1x8xf32> to vector<64x8xf32>
    %26 = arith.addf %24, %25 : vector<64x8xf32>
    %27 = arith.truncf %26 : vector<64x8xf32> to vector<64x8xbf16>
    %28 = vector.broadcast %19 : vector<1x8xf32> to vector<32x8xf32>
    %29 = arith.mulf %3, %28 : vector<32x8xf32>
    %30 = vector.broadcast %22 : vector<1x8xf32> to vector<32x8xf32>
    %31 = arith.addf %29, %30 : vector<32x8xf32>
    %32 = arith.truncf %31 : vector<32x8xf32> to vector<32x8xbf16>
    %c0_17 = arith.constant 0 : index
    %c0_18 = arith.constant 0 : index
    %33 = vector.load %arg8[%c0_17, %c0_18] : memref<8x8xbf16, #tpu.memory_space<vmem>>, vector<8x8xbf16>
    %cst_19 = arith.constant dense<0.000000e+00> : vector<64x8xf32>
    %34 = tpu.matmul %27, %33, %cst_19 {dimension_numbers = #tpu.dot_dimension_numbers<[1], [0], [0], [1], [0, 0, 1, 1], [], []>} : vector<64x8xbf16>, vector<8x8xbf16>, vector<64x8xf32> -> vector<64x8xf32>
    %35 = arith.truncf %34 : vector<64x8xf32> to vector<64x8xbf16>
    %c0_20 = arith.constant 0 : index
    %c0_21 = arith.constant 0 : index
    %36 = vector.load %arg9[%c0_20, %c0_21] : memref<8x8xbf16, #tpu.memory_space<vmem>>, vector<8x8xbf16>
    %cst_22 = arith.constant dense<0.000000e+00> : vector<64x8xf32>
    %37 = tpu.matmul %27, %36, %cst_22 {dimension_numbers = #tpu.dot_dimension_numbers<[1], [0], [0], [1], [0, 0, 1, 1], [], []>} : vector<64x8xbf16>, vector<8x8xbf16>, vector<64x8xf32> -> vector<64x8xf32>
    %38 = arith.truncf %37 : vector<64x8xf32> to vector<64x8xbf16>
    %c0_23 = arith.constant 0 : index
    %c0_24 = arith.constant 0 : index
    %39 = vector.load %arg7[%c0_23, %c0_24] : memref<8x8xbf16, #tpu.memory_space<vmem>>, vector<8x8xbf16>
    %cst_25 = arith.constant dense<0.000000e+00> : vector<32x8xf32>
    %40 = tpu.matmul %32, %39, %cst_25 {dimension_numbers = #tpu.dot_dimension_numbers<[1], [0], [0], [1], [0, 0, 1, 1], [], []>} : vector<32x8xbf16>, vector<8x8xbf16>, vector<32x8xf32> -> vector<32x8xf32>
    %41 = arith.truncf %40 : vector<32x8xf32> to vector<32x8xbf16>
    %cst_26 = arith.constant 0.000000e+00 : f32
    %42 = vector.broadcast %cst_26 : f32 to vector<32x8xf32>
    %cst_27 = arith.constant dense<0.000000e+00> : vector<32x64xf32>
    %43 = tpu.matmul %41, %35, %cst_27 {dimension_numbers = #tpu.dot_dimension_numbers<[1], [1], [0], [0], [0, 0, 1, 0], [], []>} : vector<32x8xbf16>, vector<64x8xbf16>, vector<32x64xf32> -> vector<32x64xf32>
    %cst_28 = arith.constant dense<0xFF800000> : vector<32xf32>
    %44 = vector.multi_reduction <maximumf>, %43, %cst_28 [1] : vector<32x64xf32> to vector<32xf32>
    %45 = vector.shape_cast %44 : vector<32xf32> to vector<32x1xf32>
    %46 = vector.broadcast %45 : vector<32x1xf32> to vector<32x64xf32>
    %47 = arith.subf %43, %46 : vector<32x64xf32>
    %48 = math.exp %47 : vector<32x64xf32>
    %cst_29 = arith.constant dense<0.000000e+00> : vector<32xf32>
    %49 = vector.multi_reduction <add>, %48, %cst_29 [1] : vector<32x64xf32> to vector<32xf32>
    %50 = vector.shape_cast %49 : vector<32xf32> to vector<32x1xf32>
    %51 = tpu.reciprocal %50 {approx = true} : vector<32x1xf32> -> vector<32x1xf32>
    %52 = vector.broadcast %51 : vector<32x1xf32> to vector<32x64xf32>
    %53 = arith.mulf %48, %52 : vector<32x64xf32>
    %54 = arith.truncf %53 : vector<32x64xf32> to vector<32x64xbf16>
    %cst_30 = arith.constant dense<0.000000e+00> : vector<32x8xf32>
    %55 = tpu.matmul %54, %38, %cst_30 {dimension_numbers = #tpu.dot_dimension_numbers<[1], [0], [0], [1], [0, 0, 1, 1], [], []>} : vector<32x64xbf16>, vector<64x8xbf16>, vector<32x8xf32> -> vector<32x8xf32>
    %56 = arith.truncf %55 : vector<32x8xf32> to vector<32x8xbf16>
    %c0_31 = arith.constant 0 : index
    %c0_32 = arith.constant 0 : index
    %57 = vector.load %arg10[%c0_31, %c0_32] : memref<8x8xbf16, #tpu.memory_space<vmem>>, vector<8x8xbf16>
    %cst_33 = arith.constant dense<0.000000e+00> : vector<32x8xf32>
    %58 = tpu.matmul %56, %57, %cst_33 {dimension_numbers = #tpu.dot_dimension_numbers<[1], [0], [0], [1], [0, 0, 1, 1], [], []>} : vector<32x8xbf16>, vector<8x8xbf16>, vector<32x8xf32> -> vector<32x8xf32>
    %59 = arith.addf %42, %58 : vector<32x8xf32>
    %c0_34 = arith.constant 0 : index
    %c0_35 = arith.constant 0 : index
    %60 = vector.load %arg11[%c0_34, %c0_35] : memref<1x8xf32, #tpu.memory_space<vmem>>, vector<1x8xf32>
    %61 = vector.broadcast %60 : vector<1x8xf32> to vector<32x8xf32>
    %62 = arith.addf %59, %61 : vector<32x8xf32>
    %63 = arith.addf %62, %3 : vector<32x8xf32>
    %c0_36 = arith.constant 0 : index
    %c0_37 = arith.constant 0 : index
    %c0_38 = arith.constant 0 : index
    %64 = vector.load %arg12[%c0_36, %c0_37, %c0_38] : memref<1x32x8xf32, #tpu.memory_space<vmem>>, vector<1x32x8xf32>
    %65 = vector.shape_cast %64 : vector<1x32x8xf32> to vector<32x8xf32>
    %66 = vector.shape_cast %63 : vector<32x8xf32> to vector<1x32x8xf32>
    tpu.vector_store %arg12[%c0_36, %c0_37, %c0_38], %66 {strides = array<i32>} : memref<1x32x8xf32, #tpu.memory_space<vmem>>, vector<1x32x8xf32>,
    return
  }
  func.func @transform_0(%arg0: i32, %arg1: i32) -> (i32, i32, i32) {
    %c0_i32 = arith.constant 0 : i32
    %c0_i32_0 = arith.constant 0 : i32
    %c0_i32_1 = arith.constant 0 : i32
    return %arg0, %c0_i32, %c0_i32_0 : i32, i32, i32
  }
  func.func @transform_1(%arg0: i32, %arg1: i32) -> (i32, i32, i32) {
    %c0_i32 = arith.constant 0 : i32
    %c0_i32_0 = arith.constant 0 : i32
    return %arg0, %arg1, %c0_i32 : i32, i32, i32
  }
  func.func @transform_2(%arg0: i32, %arg1: i32) -> (i32, i32) {
    %c0_i32 = arith.constant 0 : i32
    %c0_i32_0 = arith.constant 0 : i32
    %c0_i32_1 = arith.constant 0 : i32
    return %c0_i32, %c0_i32_0 : i32, i32
  }
  func.func @transform_3(%arg0: i32, %arg1: i32) -> (i32, i32) {
    %c0_i32 = arith.constant 0 : i32
    %c0_i32_0 = arith.constant 0 : i32
    %c0_i32_1 = arith.constant 0 : i32
    return %c0_i32, %c0_i32_0 : i32, i32
  }
  func.func @transform_4(%arg0: i32, %arg1: i32) -> (i32, i32) {
    %c0_i32 = arith.constant 0 : i32
    %c0_i32_0 = arith.constant 0 : i32
    %c0_i32_1 = arith.constant 0 : i32
    return %c0_i32, %c0_i32_0 : i32, i32
  }
  func.func @transform_5(%arg0: i32, %arg1: i32) -> (i32, i32) {
    %c0_i32 = arith.constant 0 : i32
    %c0_i32_0 = arith.constant 0 : i32
    %c0_i32_1 = arith.constant 0 : i32
    return %c0_i32, %c0_i32_0 : i32, i32
  }
  func.func @transform_6(%arg0: i32, %arg1: i32) -> (i32, i32) {
    %c0_i32 = arith.constant 0 : i32
    %c0_i32_0 = arith.constant 0 : i32
    %c0_i32_1 = arith.constant 0 : i32
    return %c0_i32, %c0_i32_0 : i32, i32
  }
  func.func @transform_7(%arg0: i32, %arg1: i32) -> (i32, i32) {
    %c0_i32 = arith.constant 0 : i32
    %c0_i32_0 = arith.constant 0 : i32
    %c0_i32_1 = arith.constant 0 : i32
    return %c0_i32, %c0_i32_0 : i32, i32
  }
  func.func @transform_8(%arg0: i32, %arg1: i32) -> (i32, i32) {
    %c0_i32 = arith.constant 0 : i32
    %c0_i32_0 = arith.constant 0 : i32
    %c0_i32_1 = arith.constant 0 : i32
    return %c0_i32, %c0_i32_0 : i32, i32
  }
  func.func @transform_9(%arg0: i32, %arg1: i32) -> (i32, i32) {
    %c0_i32 = arith.constant 0 : i32
    %c0_i32_0 = arith.constant 0 : i32
    %c0_i32_1 = arith.constant 0 : i32
    return %c0_i32, %c0_i32_0 : i32, i32
  }
  func.func @transform_10(%arg0: i32, %arg1: i32) -> (i32, i32, i32) {
    %c0_i32 = arith.constant 0 : i32
    %c0_i32_0 = arith.constant 0 : i32
    return %arg0, %arg1, %c0_i32 : i32, i32, i32
  }
}

</mosaic_0001>

<bundles_post_ra>
// kernel: tpu_custom_call.1
= control target key start
LH: loop header
LB: loop body
LE: loop exit
PB: predicated region body
PF: predicated region fallthrough
CT: control target
= control target key end

     0   :  { %s1146_s13 = smov 0   ;;  %s1148_s14 = smov 0   ;;  %s1356_s0 = inlined_call_operand.vmem [shape: f32[2,64,8], index: 0, kind: input, shape index: {}]   ;;  %s1357_s1 = inlined_call_operand.vmem [shape: f32[2,64,8], index: 1, kind: input, shape index: {}]   ;;  %s1358_s2 = inlined_call_operand.vmem [shape: f32[1,8], index: 2, kind: input, shape index: {}]   ;;  %s1359_s3 = inlined_call_operand.vmem [shape: f32[1,8], index: 3, kind: input, shape index: {}]   ;;  %s1360_s4 = inlined_call_operand.vmem [shape: f32[8,8], index: 4, kind: input, shape index: {}]   ;;  %s1361_s5 = inlined_call_operand.vmem [shape: bf16[8,8], index: 5, kind: input, shape index: {}]   ;;  %s1362_s6 = inlined_call_operand.vmem [shape: bf16[8,8], index: 6, kind: input, shape index: {}]   ;;  %s1363_s7 = inlined_call_operand.vmem [shape: bf16[8,8], index: 7, kind: input, shape index: {}]   ;;  %s1364_s8 = inlined_call_operand.vmem [shape: bf16[8,8], index: 8, kind: input, shape index: {}]   ;;  %s1365_s9 = inlined_call_operand.vmem [shape: f32[1,8], index: 9, kind: input, shape index: {}]   ;;  %s1366_s10 = inlined_call_operand.vmem [shape: f32[2,64,8], index: 10, kind: output, shape index: {}]  }
   0x1   :  { %s1150_s15 = smov 0   ;;  %s1152_s16 = smov 0  }
   0x2   :  { %s1154_s17 = smov 0  }
   0x3 LB: > { %s29_s18 = sadd.s32 1, %s1081_s15  ;;  %s32_s19 = sadd.s32 1, %s1085_s16  ;;  %s1089_s17 = sphi %s1154_s17, %s20_s17   ;;  %s1085_s16 = sphi %s1152_s16, %s1370_s16   ;;  %s1081_s15 = sphi %s1150_s15, %s1369_s15   ;;  %s1077_s14 = sphi %s1148_s14, %s1368_s14   ;;  %s1073_s13 = sphi %s1146_s13, %s1367_s13  }
   0x4   : > { %p30_p0 = scmp.ge.s32.totalorder %s29_s18, 2  ;;  %p958_p1 = scmp.ge.s32.totalorder %s1089_s17, 1 }
   0x5   : > { %p343_p2 = scmp.lt.s32.totalorder %s1089_s17, 5 }
   0x6   : > { %s1372_s18 = smov (%p30_p0, %s29_s18), 0  ;;  %s1374_s19 = smov (!%p30_p0, %s32_s19), %s1085_s16 }
   0x7   : > { %p344_p3 = pnand %p958_p1, %p343_p2  ;;  %p34_p4 = scmp.ge.s32.totalorder %s1374_s19, 2 }
   0x8   : > { %p394_p5 = scmp.lt.s32.totalorder (!%p344_p3), %s1077_s14, 1  ;;  %s961_s12 = sshll.u32 (!%p344_p3), %s1073_s13, 2 }
   0x9   : > { %s1376_s19 = smov (%p34_p4, %s1374_s19), 0  ;;  %347 = sbr.rel (%p344_p3) target bundleno = 1111 (0x457), region = 60 }
   0xa   : > { %p402_p6 = scmp.lt.s32.totalorder (!%p344_p3), %s961_s12, 7 }
   0xe   : > { %v483_v0 = vld [vmem:[%s1360_s4] sm:$0xff]  ;;  %s1378_s14 = smov (!%p394_p5, %s1077_s14), 1  ;;  %vm432_vm0 = vcmask 64512   ;;  %vm595_vm1 = vcmask 1043456   ;;  %s1380_s12 = smov (!%p402_p6, %s961_s12), 7  ;;  %vm737_vm5 = vcmask 523264  }
   0xf   : > { %502 = vmatpush.msra.mxu0 %v483_v0  ;;  %525 = vmatpush.msra.mxu1 %v483_v0  ;;  %s987_s22 = sshll.u32 %s1378_s14, 6  ;;  %v582_v61 = vld [vmem:[%s1362_s6] sm:$0xf]  ;;  %s962_s20 = sshll.u32 %s1378_s14, 3 }
  0x10   : > { %s398_s25 = scalar_lea.vmem %s1356_s0, %s987_s22  ;;  %v632_v62 = vld [vmem:[%s1363_s7] sm:$0xf]  ;;  %v597_v63 = vsel %vm595_vm1, %v582_v61, 0  ;;  %s1259_s21 = sadd.s32 %s962_s20, %s1380_s12 }
  0x11   : > { %v1187_v1 = vld [vmem:[%s398_s25] sm:$0xff]  ;;  %v1189_v2 = vld [vmem:[%s398_s25 + $0x8] sm:$0xff]  ;;  %v1191_v3 = vld [vmem:[%s398_s25 + $0x10] sm:$0xff]  ;;  %v634_v0 = vsel %vm595_vm1, %v632_v62, 0  ;;  %606 = vmatpush.bf16.msra.mxu2 %v597_v63  ;;  %s963_s13 = sshll.u32 %s1259_s21, 3 }
  0x12   : > { %v1193_v4 = vld [vmem:[%s398_s25 + $0x18] sm:$0xff]  ;;  %v433_v5 = vsel %vm432_vm0, %v1187_v1, 0.0  ;;  %v434_v6 = vsel %vm432_vm0, %v1189_v2, 0.0  ;;  %v436_v7 = vsel %vm432_vm0, %v1191_v3, 0.0  ;;  %v454_v8 = vmul.f32 %v1187_v1, %v1187_v1  ;;  %v1203_v9 = vld [vmem:[%s398_s25 + $0x20] sm:$0xff]  ;;  %v1211_v14 = vld [vmem:[%s398_s25 + $0x28] sm:$0xff]  ;;  %643 = vmatpush.bf16.msra.mxu3 %v634_v0  ;;  %s417_s22 = scalar_lea.vmem %s1366_s10, %s963_s13 }
  0x13   : > { %v435_v10 = vadd.f32 %v434_v6, %v433_v5  ;;  %v438_v11 = vsel %vm432_vm0, %v1193_v4, 0.0  ;;  %v455_v12 = vmul.f32 %v1189_v2, %v1189_v2  ;;  %v456_v13 = vmul.f32 %v1191_v3, %v1191_v3  ;;  %v1221_v21 = vld [vmem:[%s398_s25 + $0x30] sm:$0xff]  ;;  %v1229_v28 = vld [vmem:[%s398_s25 + $0x38] sm:$0xff]  ;;  %v669_v5 = vld [vmem:[%s1361_s5] sm:$0xf]  ;;  %s407_s25 = scalar_lea.vmem %s1357_s1, %s963_s13 }
  0x14   : > { %v457_v16 = vmul.f32 %v1193_v4, %v1193_v4  ;;  %v440_v17 = vsel %vm432_vm0, %v1203_v9, 0.0  ;;  %v458_v18 = vmul.f32 %v1203_v9, %v1203_v9  ;;  %v462_v19 = vsel %vm432_vm0, %v454_v8, 0.0 }
  0x15   : > { %v437_v15 = vadd.f32 %v436_v7, %v435_v10  ;;  %v463_v20 = vsel %vm432_vm0, %v455_v12, 0.0  ;;  %v465_v24 = vsel %vm432_vm0, %v456_v13, 0.0  ;;  %v442_v25 = vsel %vm432_vm0, %v1211_v14, 0.0 }
  0x16   : > { %v464_v23 = vadd.f32 %v463_v20, %v462_v19  ;;  %v459_v26 = vmul.f32 %v1211_v14, %v1211_v14  ;;  %v467_v27 = vsel %vm432_vm0, %v457_v16, 0.0  ;;  %v444_v31 = vsel %vm432_vm0, %v1221_v21, 0.0 }
  0x17   : > { %v439_v22 = vadd.f32 %v438_v11, %v437_v15  ;;  %v460_v32 = vmul.f32 %v1221_v21, %v1221_v21  ;;  %v469_v33 = vsel %vm432_vm0, %v458_v18, 0.0  ;;  %v446_v36 = vsel %vm432_vm0, %v1229_v28, 0.0  ;;  %v543_v18 = vld [vmem:[%s1358_s2] sm:$0x1] }
  0x18   : > { %v466_v30 = vadd.f32 %v465_v24, %v464_v23  ;;  %v461_v37 = vmul.f32 %v1229_v28, %v1229_v28  ;;  %v471_v38 = vsel %vm432_vm0, %v459_v26, 0.0  ;;  %v677_v6 = vsel %vm595_vm1, %v669_v5, 0  ;;  %v1275_v26 = vld [vmem:[%s407_s25 + $0x8] sm:$0xff] }
  0x19   : > { %v441_v29 = vadd.f32 %v440_v17, %v439_v22  ;;  %v473_v41 = vsel %vm432_vm0, %v460_v32, 0.0  ;;  %686 = vmatpush.bf16.msrb.mxu0 %v677_v6  ;;  %v545_v22 = vld [vmem:[%s1359_s3] sm:$0x1] }
  0x1a   : > { %v468_v35 = vadd.f32 %v467_v27, %v466_v30  ;;  %v475_v44 = vsel %vm432_vm0, %v461_v37, 0.0 }
  0x1b   : > { %v443_v34 = vadd.f32 %v442_v25, %v441_v29  ;;  %v1273_v25 = vld [vmem:[%s407_s25] sm:$0xff] }
  0x1c   : > { %v470_v40 = vadd.f32 %v469_v33, %v468_v35 }
  0x1d   : > { %v445_v39 = vadd.f32 %v444_v31, %v443_v34 }
  0x1e   : > { %v472_v43 = vadd.f32 %v471_v38, %v470_v40  ;;  %v1286_v40 = vld [vmem:[%s407_s25 + $0x18] sm:$0xff] }
  0x1f   : > { %v447_v42 = vadd.f32 %v446_v36, %v445_v39 }
  0x20   : > { %v474_v46 = vadd.f32 %v473_v41, %v472_v43 }
  0x21   : > { %v448_v45 = vrot.slane %v447_v42, 4 }
  0x22   : > { %v476_v48 = vadd.f32 %v475_v44, %v474_v46 }
  0x23   : > { %v449_v47 = vadd.f32 %v448_v45, %v447_v42 }
  0x24   : > { %v477_v50 = vrot.slane %v476_v48, 4 }
  0x25   : > { %v450_v49 = vrot.slane %v449_v47, 2 }
  0x26   : > { %v478_v52 = vadd.f32 %v477_v50, %v476_v48 }
  0x27   : > { %v451_v51 = vadd.f32 %v450_v49, %v449_v47 }
  0x28   : > { %v479_v54 = vrot.slane %v478_v52, 2 }
  0x29   : > { %v452_v53 = vrot.slane %v451_v51, 1 }
  0x2a   : > { %v480_v56 = vadd.f32 %v479_v54, %v478_v52 }
  0x2b   : > { %v453_v55 = vadd.f32 %v452_v53, %v451_v51 }
  0x2c   : > { %v481_v57 = vrot.slane %v480_v56, 1 }
  0x2d   : > { %967 = vmatmul.msk.f32.vlgmr.msra.gmra.mxu0 %vm432_vm0, %v453_v55 }
  0x2e   : > { %v482_v58 = vadd.f32 %v481_v57, %v480_v56 }
  0x30   : > { %968 = vmatmul.msk.f32.vlgmr.msra.gmra.mxu1 %vm432_vm0, %v482_v58 }
  0xaa   : > { %v504_v59 = vpop.f32.mrf.mxu0 }
  0xab   : > { %v530_v60 = vmul.f32 %v504_v59, %v504_v59 }
  0xad   : > { %v527_v7 = vpop.f32.mrf.mxu1 }
  0xae   : > { %v531_v8 = vsub.f32 %v527_v7, %v530_v60 }
  0xb0   : > { %v532_v10 = vadd.f32 1e-05, %v531_v8 }
  0xb2   : > { %1033 = vrsqrt.f32 %v532_v10  ;;  %vm539_vm3 = vweird.f32 %v532_v10 }
  0xb8   : > { %v1034_v11 = vpop.eup %1033 }
  0xb9   : > { %v534_v12 = vmul.f32 %v1034_v11, %v532_v10  ;;  %vm540_vm2 = vweird.f32 %v1034_v11 }
  0xba   : > { %vm541_vm4 = vmor %vm539_vm3, %vm540_vm2 }
  0xbb   : > { %v535_v13 = vmul.f32 %v1034_v11, %v534_v12 }
  0xbd   : > { %v536_v15 = vmul.f32 0.5, %v535_v13 }
  0xbf   : > { %v537_v16 = vsub.f32 1.5, %v536_v15 }
  0xc1   : > { %v538_v17 = vmul.f32 %v1034_v11, %v537_v16 }
  0xc3   : > { %v542_v19 = vsel %vm541_vm4, %v1034_v11, %v538_v17 }
  0xc4   : > { %v544_v20 = vmul.f32 %v543_v18, %v542_v19 }
  0xc6   : > { %v546_v23 = vmul.f32 %v544_v20, %v504_v59  ;;  %v548_v24 = vperm.slane %v544_v20, 0 }
  0xc8   : > { %v547_v27 = vsub.f32 %v545_v22, %v546_v23  ;;  %v549_v29 = vmul.f32 %v548_v24, %v1187_v1  ;;  %v550_v31 = vmul.f32 %v548_v24, %v1189_v2  ;;  %v572_v32 = vmul.f32 %v548_v24, %v1273_v25  ;;  %v1284_v1 = vld [vmem:[%s407_s25 + $0x10] sm:$0xff] }
  0xc9   : > { %v573_v33 = vmul.f32 %v548_v24, %v1275_v26  ;;  %v551_v2 = vmul.f32 %v548_v24, %v1191_v3  ;;  %v552_v41 = vmul.f32 %v548_v24, %v1193_v4  ;;  %v574_v42 = vmul.f32 %v548_v24, %v1284_v1 }
  0xca   : > { %v558_v30 = vperm.slane %v547_v27, 0  ;;  %v575_v43 = vmul.f32 %v548_v24, %v1286_v40  ;;  %v553_v3 = vmul.f32 %v548_v24, %v1203_v9  ;;  %v554_v4 = vmul.f32 %v548_v24, %v1211_v14 }
  0xcb   : > { %v555_v53 = vmul.f32 %v548_v24, %v1221_v21  ;;  %v556_v54 = vmul.f32 %v548_v24, %v1229_v28 }
  0xcc   : > { %v560_v34 = vadd.f32 %v558_v30, %v549_v29  ;;  %v561_v35 = vadd.f32 %v558_v30, %v550_v31  ;;  %v576_v36 = vadd.f32 %v572_v32, %v558_v30  ;;  %v577_v37 = vadd.f32 %v573_v33, %v558_v30 }
  0xcd   : > { %v562_v44 = vadd.f32 %v558_v30, %v551_v2  ;;  %v563_v45 = vadd.f32 %v558_v30, %v552_v41  ;;  %v578_v46 = vadd.f32 %v574_v42, %v558_v30  ;;  %v579_v47 = vadd.f32 %v575_v43, %v558_v30 }
  0xce   : > { %v568_v38 = vpack.c.bf16 %v561_v35, %v560_v34  ;;  %v580_v39 = vpack.c.bf16 %v577_v37, %v576_v36  ;;  %v564_v50 = vadd.f32 %v558_v30, %v553_v3  ;;  %v565_v51 = vadd.f32 %v558_v30, %v554_v4 }
  0xcf   : > { %v569_v48 = vpack.c.bf16 %v563_v45, %v562_v44  ;;  %v581_v49 = vpack.c.bf16 %v579_v47, %v578_v46  ;;  %v566_v55 = vadd.f32 %v558_v30, %v555_v53  ;;  %v567_v56 = vadd.f32 %v558_v30, %v556_v54 }
  0xd0   : > { %969 = vmatmul.msk.bf16.vlgmr.msra.gmra.mxu2 %vm432_vm0, %v568_v38  ;;  %973 = vmatmul.msk.bf16.vlgmr.msra.gmra.mxu3 %vm432_vm0, %v568_v38  ;;  %v570_v52 = vpack.c.bf16 %v565_v51, %v564_v50 }
  0xd1   : > { %977 = vmatmul.msk.bf16.vlgmr.msrb.gmra.mxu0 %vm432_vm0, %v580_v39  ;;  %v571_v57 = vpack.c.bf16 %v567_v56, %v566_v55 }
  0xe0   : > { %970 = vmatmul.msk.bf16.gmra.mxu2 %vm432_vm0, %v569_v48  ;;  %974 = vmatmul.msk.bf16.gmra.mxu3 %vm432_vm0, %v569_v48 }
  0xe1   : > { %978 = vmatmul.msk.bf16.gmra.mxu0 %vm432_vm0, %v581_v49 }
  0xf0   : > { %971 = vmatmul.msk.bf16.gmra.mxu2 %vm432_vm0, %v570_v52  ;;  %975 = vmatmul.msk.bf16.gmra.mxu3 %vm432_vm0, %v570_v52 }
 0x100   : > { %972 = vmatmul.msk.bf16.gmra.mxu2 %vm432_vm0, %v571_v57  ;;  %976 = vmatmul.msk.bf16.gmra.mxu3 %vm432_vm0, %v571_v57 }
 0x14e   : > { %v688_v10 = vpop.f32.mrf.mxu0 }
 0x153   : > { %v608_v9 = vpop.f32.mrf.mxu2  ;;  %v645_v14 = vpop.f32.mrf.mxu3 }
 0x156   : > { %v690_v20 = vpop.f32.mrf.mxu0 }
 0x157   : > { %v698_v32 = vpack.c.bf16 %v690_v20, %v688_v10  ;;  %v1032_v20 = vld [vmem:[%s1365_s9] ss:$0 sm:$0xff] }
 0x15b   : > { %v610_v58 = vpop.f32.mrf.mxu2  ;;  %v647_v59 = vpop.f32.mrf.mxu3 }
 0x15c   : > { %v628_v60 = vpack.c.bf16 %v610_v58, %v608_v9  ;;  %v665_v23 = vpack.c.bf16 %v647_v59, %v645_v14 }
 0x15e   : > { %v693_v29 = vpop.f32.mrf.mxu0  ;;  %v707_v30 = vsel %vm432_vm0, %v628_v60, 0 }
 0x163   : > { %v613_v61 = vpop.f32.mrf.mxu2  ;;  %v650_v62 = vpop.f32.mrf.mxu3 }
 0x166   : > { %v695_v31 = vpop.f32.mrf.mxu0 }
 0x167   : > { %v699_v33 = vpack.c.bf16 %v695_v31, %v693_v29 }
 0x16b   : > { %v615_v63 = vpop.f32.mrf.mxu2  ;;  %v652_v0 = vpop.f32.mrf.mxu3 }
 0x16c   : > { %v666_v19 = vpack.c.bf16 %v652_v0, %v650_v62  ;;  %v629_v24 = vpack.c.bf16 %v615_v63, %v613_v61 }
 0x16e   : > { %v710_v27 = vsel %vm432_vm0, %v629_v24, 0 }
 0x173   : > { %v618_v5 = vpop.f32.mrf.mxu2  ;;  %v655_v21 = vpop.f32.mrf.mxu3 }
 0x17b   : > { %v620_v6 = vpop.f32.mrf.mxu2  ;;  %v657_v28 = vpop.f32.mrf.mxu3 }
 0x17c   : > { %v667_v17 = vpack.c.bf16 %v657_v28, %v655_v21  ;;  %v630_v18 = vpack.c.bf16 %v620_v6, %v618_v5 }
 0x17e   : > { %v713_v22 = vsel %vm432_vm0, %v630_v18, 0 }
 0x183   : > { %v623_v7 = vpop.f32.mrf.mxu2  ;;  %v660_v8 = vpop.f32.mrf.mxu3 }
 0x18b   : > { %v625_v11 = vpop.f32.mrf.mxu2  ;;  %v662_v12 = vpop.f32.mrf.mxu3 }
 0x18c   : > { %v631_v13 = vpack.c.bf16 %v625_v11, %v623_v7  ;;  %v668_v15 = vpack.c.bf16 %v662_v12, %v660_v8  ;;  %v811_v11 = vld [vmem:[%s1364_s8] sm:$0xf] }
 0x18d   : > { %v823_v12 = vsel %vm595_vm1, %v811_v11, 0 }
 0x18e   : > { %794 = vmatpush.bf16.msra.mxu0 %v668_v15  ;;  %v716_v16 = vsel %vm432_vm0, %v631_v13, 0 }
 0x18f   : > { %722 = vmatpush.bf16.xpose.msrb.mxu1 %v716_v16  ;;  %988 = vmatpush.bf16.xpose.msrb.mxu2 %v716_v16 }
 0x192   : > { %795 = vmatpush.bf16.msra.mxu0 %v667_v17 }
 0x196   : > { %796 = vmatpush.bf16.msra.mxu0 %v666_v19 }
 0x197   : > { %723 = vmatpush.bf16.xpose.msrb.mxu1 %v713_v22  ;;  %989 = vmatpush.bf16.xpose.msrb.mxu2 %v713_v22 }
 0x19a   : > { %797 = vmatpush.bf16.msra.mxu0 %v665_v23 }
 0x19f   : > { %724 = vmatpush.bf16.xpose.msrb.mxu1 %v710_v27  ;;  %990 = vmatpush.bf16.xpose.msrb.mxu2 %v710_v27 }
 0x1a7   : > { %725 = vmatpush.bf16.xpose.msrb.mxu1 %v707_v30  ;;  %991 = vmatpush.bf16.xpose.msrb.mxu2 %v707_v30 }
 0x1ae   : > { %979 = vmatmul.msk.bf16.vlgmr.msrb.gmra.mxu1 %vm432_vm0, %v698_v32  ;;  %980 = vmatmul.msk.bf16.vlgmr.msrb.gmra.mxu2 %vm432_vm0, %v699_v33 }
 0x1af   : > { %832 = vmatpush.bf16.msra.mxu1 %v823_v12 }
 0x22b   : > { %v727_v34 = vpop.f32.mrf.mxu1 }
 0x22c   : > { %v738_v35 = vsel %vm737_vm5, %v727_v34, -inf }
 0x22d   : > { %739 = vmax.xlane.f32.xlu0 %v738_v35 }
 0x231   : > { %v732_v36 = vpop.f32.mrf.mxu2 }
 0x232   : > { %v744_v37 = vsel %vm737_vm5, %v732_v36, -inf }
 0x233   : > { %745 = vmax.xlane.f32.xlu1 %v744_v37  ;;  %v729_v38 = vpop.f32.mrf.mxu1 }
 0x234   : > { %v741_v39 = vsel %vm737_vm5, %v729_v38, -inf }
 0x235   : > { %742 = vmax.xlane.f32.xlu0 %v741_v39 }
 0x239   : > { %v734_v2 = vpop.f32.mrf.mxu2 }
 0x23a   : > { %v747_v41 = vsel %vm737_vm5, %v734_v2, -inf }
 0x23b   : > { %748 = vmax.xlane.f32.xlu1 %v747_v41 }
 0x2a0   : > { %v740_v42 = vpop.xlane.xlu0 %739 }
 0x2a1   : > { %v750_v43 = vsub.f32 %v727_v34, %v740_v42 }
 0x2a3   : > { %v754_v44 = vmul.f32 1.442695, %v750_v43 }
 0x2a5   : > { %1035 = vpow2.f32 %v754_v44 }
 0x2a6   : > { %v746_v45 = vpop.xlane.xlu1 %745 }
 0x2a7   : > { %v752_v46 = vsub.f32 %v732_v36, %v746_v45 }
 0x2a8   : > { %v743_v47 = vpop.xlane.xlu0 %742 }
 0x2a9   : > { %v758_v48 = vmul.f32 1.442695, %v752_v46  ;;  %v751_v49 = vsub.f32 %v729_v38, %v743_v47 }
 0x2ab   : > { %v1036_v3 = vpop.eup %1035  ;;  %1037 = vpow2.f32 %v758_v48  ;;  %v756_v4 = vmul.f32 1.442695, %v751_v49 }
 0x2ac   : > { %v762_v50 = vsel %vm737_vm5, %v1036_v3, 0.0 }
 0x2ad   : > { %1039 = vpow2.f32 %v756_v4  ;;  %763 = vadd.xlane.f32.xlu2 %v762_v50 }
 0x2ae   : > { %v749_v51 = vpop.xlane.xlu1 %748 }
 0x2af   : > { %v753_v52 = vsub.f32 %v734_v2, %v749_v51 }
 0x2b1   : > { %v1038_v53 = vpop.eup %1037  ;;  %v760_v54 = vmul.f32 1.442695, %v753_v52 }
 0x2b2   : > { %v768_v55 = vsel %vm737_vm5, %v1038_v53, 0.0 }
 0x2b3   : > { %v1040_v56 = vpop.eup %1039  ;;  %1041 = vpow2.f32 %v760_v54  ;;  %769 = vadd.xlane.f32.xlu0 %v768_v55 }
 0x2b4   : > { %v765_v57 = vsel %vm737_vm5, %v1040_v56, 0.0 }
 0x2b5   : > { %766 = vadd.xlane.f32.xlu2 %v765_v57 }
 0x2b9   : > { %v1042_v9 = vpop.eup %1041 }
 0x2ba   : > { %v771_v14 = vsel %vm737_vm5, %v1042_v9, 0.0 }
 0x2bb   : > { %772 = vadd.xlane.f32.xlu1 %v771_v14 }
 0x320   : > { %v764_v58 = vpop.xlane.xlu2 %763 }
 0x321   : > { %1043 = vrcp.f32 %v764_v58 }
 0x326   : > { %v770_v21 = vpop.xlane.xlu0 %769 }
 0x327   : > { %v1044_v60 = vpop.eup %1043 }
 0x328   : > { %v767_v59 = vpop.xlane.xlu2 %766  ;;  %v778_v62 = vmul.f32 %v1044_v60, %v1036_v3 }
 0x329   : > { %1045 = vrcp.f32 %v767_v59 }
 0x32e   : > { %v773_v5 = vpop.xlane.xlu1 %772 }
 0x32f   : > { %v1046_v61 = vpop.eup %1045  ;;  %1047 = vrcp.f32 %v773_v5 }
 0x330   : > { %v779_v63 = vmul.f32 %v1046_v61, %v1040_v56  ;;  %1049 = vrcp.f32 %v770_v21 }
 0x332   : > { %v782_v0 = vpack.c.bf16 %v779_v63, %v778_v62 }
 0x334   : > { %981 = vmatmul.msk.bf16.vlgmr.msra.gmra.mxu0 %vm737_vm5, %v782_v0 }
 0x335   : > { %v1048_v6 = vpop.eup %1047 }
 0x336   : > { %v1050_v28 = vpop.eup %1049  ;;  %v781_v7 = vmul.f32 %v1048_v6, %v1042_v9 }
 0x337   : > { %v780_v8 = vmul.f32 %v1050_v28, %v1038_v53 }
 0x339   : > { %v783_v10 = vpack.c.bf16 %v781_v7, %v780_v8 }
 0x344   : > { %982 = vmatmul.msk.bf16.gmra.mxu0 %vm737_vm5, %v783_v10 }
 0x3b1   : > { %v799_v13 = vpop.f32.mrf.mxu0 }
 0x3b9   : > { %v801_v15 = vpop.f32.mrf.mxu0 }
 0x3ba   : > { %v809_v16 = vpack.c.bf16 %v801_v15, %v799_v13 }
 0x3bc   : > { %983 = vmatmul.msk.bf16.vlgmr.msra.gmra.mxu1 %vm432_vm0, %v809_v16 }
 0x3c1   : > { %v804_v17 = vpop.f32.mrf.mxu0 }
 0x3c9   : > { %v806_v18 = vpop.f32.mrf.mxu0 }
 0x3ca   : > { %v810_v19 = vpack.c.bf16 %v806_v18, %v804_v17 }
 0x3cc   : > { %984 = vmatmul.msk.bf16.gmra.mxu1 %vm432_vm0, %v810_v19 }
 0x439   : > { %v834_v22 = vpop.f32.mrf.mxu1 }
 0x43a   : > { %v835_v23 = vadd.f32 %v1032_v20, %v834_v22 }
 0x43c   : > { %v844_v24 = vadd.f32 %v835_v23, %v1273_v25 }
 0x43e   : > { %848 = vst.msk [vmem:[%s417_s22] sm:$0xff] %vm432_vm0, %v844_v24 }
 0x441   : > { %v836_v27 = vpop.f32.mrf.mxu1 }
 0x442   : > { %v837_v29 = vadd.f32 %v1032_v20, %v836_v27 }
 0x444   : > { %v845_v30 = vadd.f32 %v837_v29, %v1275_v26 }
 0x446   : > { %849 = vst.msk [vmem:[%s417_s22 + $0x8] sm:$0xff] %vm432_vm0, %v845_v30 }
 0x449   : > { %v839_v31 = vpop.f32.mrf.mxu1 }
 0x44a   : > { %v840_v32 = vadd.f32 %v1032_v20, %v839_v31 }
 0x44c   : > { %v846_v33 = vadd.f32 %v840_v32, %v1284_v1 }
 0x44e   : > { %850 = vst.msk [vmem:[%s417_s22 + $0x10] sm:$0xff] %vm432_vm0, %v846_v33 }
 0x451   : > { %v841_v34 = vpop.f32.mrf.mxu1 }
 0x452   : > { %v842_v35 = vadd.f32 %v1032_v20, %v841_v34 }
 0x454   : > { %v847_v36 = vadd.f32 %v842_v35, %v1286_v40 }
 0x456   : > { %851 = vst.msk [vmem:[%s417_s22 + $0x18] sm:$0xff] %vm432_vm0, %v847_v36 }
 0x457 PF: > { %s20_s17 = sadd.s32 1, %s1089_s17   ;;  %s1367_s13 = smov %s1081_s15 }
 0x458   : > { %p17_p7 = scmp.ge.s32.totalorder %s20_s17, 6   ;;  %s1368_s14 = smov %s1085_s16 }
 0x459   : > { %s1369_s15 = smov %s1372_s18  ;;  %s1370_s16 = smov %s1376_s19 }
 0x45a   :  { %19 = sbr.rel (!%p17_p7) target bundleno = 3 (0x3), region = 93 }

</bundles_post_ra>
